<compile_context>
chip_gen: v5e
topology: v5e:2x2
jax: 0.10.0
libtpu: 0.0.40
codegen_flags: <defaults>
</compile_context>

<pallas_src>
import functools

import jax
import jax.numpy as jnp
from jax.experimental import pallas as pl
from jax.experimental.pallas import tpu as pltpu

_LANE = 128                     # lane width (last dim of every block)
_FOLD = 8                       # height of the per-group lane-dense accumulator
_MIN_PALLAS_ELEMS = 1024        # pairs smaller than this stay in plain jnp
_MAX_BLOCK_ROWS = 8192          # hard cap: (8192,128) f32 = 4 MiB per block
_INPUT_VMEM_BUDGET = 20 << 20   # budget for all double-buffered input windows
_VMEM_LIMIT = 40 << 20          # explicit scoped-VMEM limit (< v7x 64 MiB phys)


def _round_up(n, m):
    return -(-n // m) * m


@functools.lru_cache(maxsize=1)
def _num_tensorcores():
    """2 TensorCores per device on megacore / dual-TC chips (v4/v5p/v7x);
    1 on v5e/v6e — there the 'parallel' axis would just be a serial loop."""
    try:
        kind = jax.devices()[0].device_kind.lower()
    except Exception:
        return 1
    return 2 if any(tag in kind for tag in ("v4", "v5p", "v7")) else 1


def _choose_block_rows(rows_list, itemsizes):
    """Largest block height whose double-buffered input windows fit the VMEM
    budget (every pair keeps 2 operands x 2 pipeline buffers resident even
    while idle — that is the price of the zero-copy fused design)."""
    cand = _MAX_BLOCK_ROWS
    while cand > _FOLD:
        need = sum(2 * 2 * min(cand, _round_up(r, _FOLD)) * _LANE * isz
                   for r, isz in zip(rows_list, itemsizes))
        if need <= _INPUT_VMEM_BUDGET:
            return cand
        cand //= 2
    return _FOLD


def _sse_jnp(a, b):
    d = a.astype(jnp.float32) - b.astype(jnp.float32)
    return jnp.sum(d * d)


def _kld_jnp(mu, logvar):
    mu = mu.astype(jnp.float32)
    logvar = logvar.astype(jnp.float32)
    return -0.5 * jnp.sum(1.0 + logvar - mu * mu - jnp.exp(logvar))


# ----------------------------------------------------------------------------
# Fused grouped SSE reduction kernel (single launch for all large pairs)
# ----------------------------------------------------------------------------
def _make_fused_sse_kernel(groups, steps_per_core):
    """`groups` is a static schedule: per group start step, #blocks, block
    rows and valid rows.  Exactly one group branch runs per grid step."""

    def kernel(*refs):
        o_ref = refs[-1]                       # (1, G, _FOLD, _LANE) resident
        in_refs = refs[:-1]

        i = pl.program_id(0)
        j = pl.program_id(1)
        s = i * steps_per_core + j             # global step

        # Zero this core's resident accumulator at the start of its sweep.
        @pl.when(j == 0)
        def _():
            o_ref[...] = jnp.zeros_like(o_ref)

        for g, grp in enumerate(groups):
            a_ref = in_refs[2 * g]
            b_ref = in_refs[2 * g + 1]

            def _accumulate(g=g, a_ref=a_ref, b_ref=b_ref,
                            start=grp["start"], brows=grp["brows"],
                            rows=grp["rows"]):
                a = a_ref[...].astype(jnp.float32)
                b = b_ref[...].astype(jnp.float32)
                d = a - b
                v = d * d                                   # (brows, 128)
                if rows % brows:                            # ragged last block
                    lb = s - start
                    valid = rows - lb * brows
                    row_id = jax.lax.broadcasted_iota(
                        jnp.int32, (brows, _LANE), 0)
                    v = jnp.where(row_id < valid, v, 0.0)
                # Fold to the accumulator height with pure VPU adds; the
                # cross-lane reduction happens once, on tiny data, outside.
                folded = jnp.sum(v.reshape(-1, _FOLD, _LANE), axis=0)
                o_ref[0, g, :, :] = o_ref[0, g, :, :] + folded

            # Single gated update: only the active pair's branch executes.
            pl.when((s >= grp["start"]) &
                    (s < grp["start"] + grp["nblk"]))(_accumulate)

    return kernel


def fused_sse(pairs):
    """Per-pair sum((a-b)^2)  (== nn.MSELoss(size_average=False) per pair).

    Large pairs are fused into ONE pallas_call that reads the original arrays
    through free (rows, 128) reshape views (no slab copy).  Tiny pairs and
    sub-128-element tails go through plain jnp (XLA fuses those)."""
    n_pairs = len(pairs)
    extras = [jnp.float32(0.0)] * n_pairs
    pallas_ops = []                            # (pair_idx, a2d, b2d, rows)

    for idx, (a, b) in enumerate(pairs):
        size = int(a.size)
        rows = size // _LANE
        main = rows * _LANE
        tail = size - main
        if size < _MIN_PALLAS_ELEMS or rows < _FOLD:
            extras[idx] = extras[idx] + _sse_jnp(a, b)
            continue
        a_flat = jnp.reshape(a, (-1,))
        b_flat = jnp.reshape(b, (-1,))
        if tail:                               # leftover < 128 elems -> jnp
            extras[idx] = extras[idx] + _sse_jnp(a_flat[main:], b_flat[main:])
            a2d = jnp.reshape(a_flat[:main], (rows, _LANE))
            b2d = jnp.reshape(b_flat[:main], (rows, _LANE))
        else:                                  # pure reshape view, zero copy
            a2d = jnp.reshape(a_flat, (rows, _LANE))
            b2d = jnp.reshape(b_flat, (rows, _LANE))
        pallas_ops.append((idx, a2d, b2d, rows))

    if not pallas_ops:
        return jnp.stack(extras)

    block_rows = _choose_block_rows([op[3] for op in pallas_ops],
                                    [op[1].dtype.itemsize for op in pallas_ops])

    # Static per-group block schedule.
    groups, in_arrays = [], []
    start = 0
    for (_idx, a2d, b2d, rows) in pallas_ops:
        brows = min(block_rows, _round_up(rows, _FOLD))
        nblk = -(-rows // brows)
        groups.append(dict(start=start, nblk=nblk, brows=brows, rows=rows))
        in_arrays += [a2d, b2d]
        start += nblk
    total_steps = start

    n_par = _num_tensorcores()
    spc = -(-total_steps // n_par)             # steps per core

    # Clamped index maps: an input only advances (and only DMAs new data)
    # while its own blocks are being processed; outside that range the block
    # index is constant and the pipeline skips the re-fetch.
    in_specs = []
    for grp in groups:
        def make_map(g_start=grp["start"], g_nblk=grp["nblk"], spc=spc):
            def index_map(i, j):
                s = i * spc + j
                return (jnp.clip(s - g_start, 0, g_nblk - 1), 0)
            return index_map
        spec = pl.BlockSpec((grp["brows"], _LANE), make_map())
        in_specs += [spec, spec]

    n_groups = len(groups)
    kernel = _make_fused_sse_kernel(groups, spc)

    out = pl.pallas_call(
        kernel,
        out_shape=jax.ShapeDtypeStruct((n_par, n_groups, _FOLD, _LANE),
                                       jnp.float32),
        grid=(n_par, spc),
        in_specs=in_specs,
        out_specs=pl.BlockSpec((1, n_groups, _FOLD, _LANE),
                               lambda i, j: (i, 0, 0, 0)),
        compiler_params=pltpu.CompilerParams(
            dimension_semantics=("parallel", "arbitrary"),
            vmem_limit_bytes=_VMEM_LIMIT),
    )(*in_arrays)

    # Tiny wrapper-side reduce of the lane-dense partials -> per-group scalars.
    group_sums = jnp.sum(out, axis=(0, 2, 3))  # (n_groups,)

    results = list(extras)
    for k, (idx, _a, _b, _r) in enumerate(pallas_ops):
        results[idx] = results[idx] + group_sums[k]
    return jnp.stack(results)


# ----------------------------------------------------------------------------
# Small deterministic "vgg" feature extractor (external module in the original
# PyTorch code; plain-JAX glue here, NHWC convs for TPU-friendly layout).
# ----------------------------------------------------------------------------
def make_vgg(key, in_ch=3, chans=(8, 16, 32, 64)):
    params = []
    cin = in_ch
    for cout in chans:
        key, kw, kb = jax.random.split(key, 3)
        w = jax.random.normal(kw, (3, 3, cin, cout), jnp.float32) * 0.1
        b = jax.random.normal(kb, (cout,), jnp.float32) * 0.01
        params.append((w, b))
        cin = cout

    def vgg(x_nchw):                            # NCHW in (PyTorch convention)
        h = jnp.transpose(x_nchw, (0, 2, 3, 1))  # -> NHWC
        feats = []
        for w, b in params:
            h = jax.lax.conv_general_dilated(
                h, w, window_strides=(1, 1), padding="SAME",
                dimension_numbers=("NHWC", "HWIO", "NHWC"))
            h = jax.nn.relu(h + b)
            feats.append(h)                      # NHWC feature map
            h = jax.lax.reduce_window(
                h, -jnp.inf, jax.lax.max,
                window_dimensions=(1, 2, 2, 1),
                window_strides=(1, 2, 2, 1),
                padding="VALID")
        return feats

    return vgg


# ----------------------------------------------------------------------------
# Loss forward (jitted, everything on device; single host transfer at the end)
# ----------------------------------------------------------------------------
def _loss_compute(vgg, recon_x, x, x_inter, x_inter_truth, z_app, z_app2,
                  mu_app, mu_pos, logvar_app, logvar_pos, z_dim,
                  alpha, beta, gamma, delta):
    f_recon = vgg(recon_x)
    f_x = vgg(x)
    f_i = vgg(x_inter)
    f_it = vgg(x_inter_truth)

    z_app_original = jax.lax.stop_gradient(z_app2)   # Variable(z_app2.data)

    # 4 perceptual levels x 2 comparisons + appearance term -> 1 pallas_call
    # for the large terms; tiny terms fall back to fused XLA reductions.
    pairs = ([(f_recon[l], f_x[l]) for l in range(4)]
             + [(f_i[l], f_it[l]) for l in range(4)]
             + [(z_app, z_app_original)])
    denoms = jnp.asarray(
        [f.shape[1] * f.shape[2] * f.shape[3] for f in f_recon]
        + [f.shape[1] * f.shape[2] * f.shape[3] for f in f_i]
        + [z_dim], dtype=jnp.float32)
    sse = fused_sse(pairs) / denoms                  # (9,)

    BCE = jnp.sum(sse[0:4])
    BCE_inter = jnp.sum(sse[4:8])
    APP = sse[8]

    # VAE KL terms are tiny (B, z_dim): plain jnp beats a pallas launch.
    KLD_APP = _kld_jnp(mu_app, logvar_app)
    KLD_POS = _kld_jnp(mu_pos, logvar_pos)

    # On-device replacement of the Python `if BCE.item() < 170` branch.
    total = jnp.where(
        BCE < 170.0,
        BCE + alpha * BCE_inter + beta * KLD_APP + gamma * KLD_POS + delta * APP,
        BCE + beta * KLD_APP + gamma * KLD_POS + delta * APP)

    return total, BCE, KLD_APP, KLD_POS, APP, BCE_inter


class PallasLoss:
    """Forward-pass port of the PyTorch `Loss` module."""

    def __init__(self, opt):
        self.bs = opt.Training["bs"]
        self.alpha = float(opt.Training["alpha"])
        self.beta = float(opt.Training["beta"])
        self.gamma = float(opt.Training["gamma"])
        self.delta = float(opt.Training["delta"])
        # vgg (a Python callable) and z_dim are static; everything else traces.
        self._compute = jax.jit(_loss_compute, static_argnums=(0, 11))

    def forward(self, recon_x, x, x_inter, x_inter_truth, z_app, z_app2, z_pos,
                mu_app, mu_pos, logvar_app, logvar_pos, vgg, z_dim):
        total, BCE, KLD_APP, KLD_POS, APP, BCE_inter = self._compute(
            vgg, recon_x, x, x_inter, x_inter_truth, z_app, z_app2,
            mu_app, mu_pos, logvar_app, logvar_pos, int(z_dim),
            self.alpha, self.beta, self.gamma, self.delta)

        # Single host transfer for the `.item()`-style reporting values (the
        # original did 6 separate blocking .item() calls); `total` stays a
        # device scalar and its threshold branch was applied on device.
        bce_v, ka_v, kp_v, app_v, bi_v = jax.device_get(
            (BCE, KLD_APP, KLD_POS, APP, BCE_inter))
        bce_item = float(bce_v)
        loss_dic = [bce_item / self.bs, float(ka_v) / self.bs,
                    float(kp_v) / self.bs, float(app_v) / self.bs,
                    float(bi_v) / self.bs]
        return total, bce_item, loss_dic

    __call__ = forward


# ----------------------------------------------------------------------------
# Pure-JAX reference (for the self-check)
# ----------------------------------------------------------------------------
def _reference_loss(vgg, recon_x, x, x_inter, x_inter_truth, z_app, z_app2,
                    mu_app, mu_pos, logvar_app, logvar_pos, z_dim,
                    alpha, beta, gamma, delta):
    sse = lambda a, b: jnp.sum(
        (a.astype(jnp.float32) - b.astype(jnp.float32)) ** 2)
    kld = lambda mu, lv: -0.5 * jnp.sum(1.0 + lv - mu * mu - jnp.exp(lv))
    f_r, f_x = vgg(recon_x), vgg(x)
    f_i, f_it = vgg(x_inter), vgg(x_inter_truth)
    BCE = sum(sse(f_r[l], f_x[l])
              / (f_r[l].shape[1] * f_r[l].shape[2] * f_r[l].shape[3])
              for l in range(4))
    BCE_inter = sum(sse(f_i[l], f_it[l])
                    / (f_i[l].shape[1] * f_i[l].shape[2] * f_i[l].shape[3])
                    for l in range(4))
    APP = sse(z_app, jax.lax.stop_gradient(z_app2)) / z_dim
    KLD_APP, KLD_POS = kld(mu_app, logvar_app), kld(mu_pos, logvar_pos)
    total = jnp.where(
        BCE < 170.0,
        BCE + alpha * BCE_inter + beta * KLD_APP + gamma * KLD_POS + delta * APP,
        BCE + beta * KLD_APP + gamma * KLD_POS + delta * APP)
    return total, BCE


# ----------------------------------------------------------------------------
# Demo / self-check
# ----------------------------------------------------------------------------
if __name__ == "__main__":
    class Opt:
        pass

    opt = Opt()
    opt.Training = {"bs": 2, "alpha": 1.0, "beta": 0.5, "gamma": 0.5,
                    "delta": 1.0}

    key = jax.random.PRNGKey(0)
    (k0, k1, k2, k3, k_za, k_za2, k_zp, k_ma, k_mp, k_la, k_lp,
     k_vgg) = jax.random.split(key, 12)

    B, C, H, W = 2, 3, 16, 16
    z_dim = 32

    recon_x = jax.random.normal(k0, (B, C, H, W), jnp.float32)
    x = jax.random.normal(k1, (B, C, H, W), jnp.float32)
    x_inter = jax.random.normal(k2, (B, C, H, W), jnp.float32)
    x_inter_truth = jax.random.normal(k3, (B, C, H, W), jnp.float32)

    z_app = jax.random.normal(k_za, (B, z_dim), jnp.float32)
    z_app2 = jax.random.normal(k_za2, (B, z_dim), jnp.float32)
    z_pos = jax.random.normal(k_zp, (B, z_dim), jnp.float32)
    mu_app = jax.random.normal(k_ma, (B, z_dim), jnp.float32)
    mu_pos = jax.random.normal(k_mp, (B, z_dim), jnp.float32)
    logvar_app = 0.1 * jax.random.normal(k_la, (B, z_dim), jnp.float32)
    logvar_pos = 0.1 * jax.random.normal(k_lp, (B, z_dim), jnp.float32)

    vgg = make_vgg(k_vgg, in_ch=C)

    loss_mod = PallasLoss(opt)
    total, bce_item, loss_dic = loss_mod.forward(
        recon_x, x, x_inter, x_inter_truth, z_app, z_app2, z_pos,
        mu_app, mu_pos, logvar_app, logvar_pos, vgg, z_dim)
    total = jax.block_until_ready(total)

    # Verify the fused Pallas reduction against a plain-JAX reference.
    ref_total, ref_bce = _reference_loss(
        vgg, recon_x, x, x_inter, x_inter_truth, z_app, z_app2,
        mu_app, mu_pos, logvar_app, logvar_pos, z_dim,
        opt.Training["alpha"], opt.Training["beta"], opt.Training["gamma"],
        opt.Training["delta"])

    assert jnp.isfinite(total), "loss is not finite"
    assert len(loss_dic) == 5
    tot_err = abs(float(total) - float(ref_total))
    assert tot_err <= 1e-3 + 1e-3 * abs(float(ref_total)), (
        f"pallas total {float(total)} vs reference {float(ref_total)}")
    bce_err = abs(bce_item - float(ref_bce))
    assert bce_err <= 1e-3 + 1e-3 * abs(float(ref_bce)), (
        f"pallas BCE {bce_item} vs reference {float(ref_bce)}")
    print("KERNEL_OK")
</pallas_src>

<mosaic_0001>
module attributes {stable_mosaic.version = 11 : i64} {
  func.func @kernel(%arg0: i32, %arg1: i32, %arg2: memref<32x128xf32, #tpu.memory_space<vmem>>, %arg3: memref<32x128xf32, #tpu.memory_space<vmem>>, %arg4: memref<16x128xf32, #tpu.memory_space<vmem>>, %arg5: memref<16x128xf32, #tpu.memory_space<vmem>>, %arg6: memref<8x128xf32, #tpu.memory_space<vmem>>, %arg7: memref<8x128xf32, #tpu.memory_space<vmem>>, %arg8: memref<32x128xf32, #tpu.memory_space<vmem>>, %arg9: memref<32x128xf32, #tpu.memory_space<vmem>>, %arg10: memref<16x128xf32, #tpu.memory_space<vmem>>, %arg11: memref<16x128xf32, #tpu.memory_space<vmem>>, %arg12: memref<8x128xf32, #tpu.memory_space<vmem>>, %arg13: memref<8x128xf32, #tpu.memory_space<vmem>>, %arg14: memref<1x6x8x128xf32, #tpu.memory_space<vmem>>) attributes {dimension_semantics = [#tpu.dimension_semantics<parallel>, #tpu.dimension_semantics<arbitrary>], iteration_bounds = array<i64: 1, 6>, scalar_prefetch = 0 : i64, scratch_operands = 0 : i64, tpu.core_type = #tpu.core_type<tc>, window_params = [{transform_indices = @transform_0, window_bounds = array<i64: 32, 128>}, {transform_indices = @transform_1, window_bounds = array<i64: 32, 128>}, {transform_indices = @transform_2, window_bounds = array<i64: 16, 128>}, {transform_indices = @transform_3, window_bounds = array<i64: 16, 128>}, {transform_indices = @transform_4, window_bounds = array<i64: 8, 128>}, {transform_indices = @transform_5, window_bounds = array<i64: 8, 128>}, {transform_indices = @transform_6, window_bounds = array<i64: 32, 128>}, {transform_indices = @transform_7, window_bounds = array<i64: 32, 128>}, {transform_indices = @transform_8, window_bounds = array<i64: 16, 128>}, {transform_indices = @transform_9, window_bounds = array<i64: 16, 128>}, {transform_indices = @transform_10, window_bounds = array<i64: 8, 128>}, {transform_indices = @transform_11, window_bounds = array<i64: 8, 128>}, {transform_indices = @transform_12, window_bounds = array<i64: 1, 6, 8, 128>}]} {
    %c6_i32 = arith.constant 6 : i32
    %0 = arith.muli %arg0, %c6_i32 : i32
    %1 = arith.addi %0, %arg1 : i32
    %c0_i32 = arith.constant 0 : i32
    %2 = arith.cmpi eq, %arg1, %c0_i32 : i32
    %3 = arith.extui %2 : i1 to i32
    %c0_i32_0 = arith.constant 0 : i32
    %4 = arith.cmpi ne, %3, %c0_i32_0 : i32
    scf.if %4 {
      %cst = arith.constant 0.000000e+00 : f32
      %35 = vector.broadcast %cst : f32 to vector<1x6x8x128xf32>
      %c0 = arith.constant 0 : index
      %c0_14 = arith.constant 0 : index
      %c0_15 = arith.constant 0 : index
      %c0_16 = arith.constant 0 : index
      %36 = vector.load %arg14[%c0, %c0_14, %c0_15, %c0_16] : memref<1x6x8x128xf32, #tpu.memory_space<vmem>>, vector<1x6x8x128xf32>
      tpu.vector_store %arg14[%c0, %c0_14, %c0_15, %c0_16], %35 {strides = array<i32>} : memref<1x6x8x128xf32, #tpu.memory_space<vmem>>, vector<1x6x8x128xf32>,
    } else {
    }
    %c0_i32_1 = arith.constant 0 : i32
    %5 = arith.cmpi sge, %1, %c0_i32_1 : i32
    %c1_i32 = arith.constant 1 : i32
    %6 = arith.cmpi slt, %1, %c1_i32 : i32
    %7 = arith.andi %5, %6 : i1
    %8 = arith.extui %7 : i1 to i32
    %c0_i32_2 = arith.constant 0 : i32
    %9 = arith.cmpi ne, %8, %c0_i32_2 : i32
    scf.if %9 {
      %c0 = arith.constant 0 : index
      %c0_14 = arith.constant 0 : index
      %35 = vector.load %arg2[%c0, %c0_14] : memref<32x128xf32, #tpu.memory_space<vmem>>, vector<32x128xf32>
      %c0_15 = arith.constant 0 : index
      %c0_16 = arith.constant 0 : index
      %36 = vector.load %arg3[%c0_15, %c0_16] : memref<32x128xf32, #tpu.memory_space<vmem>>, vector<32x128xf32>
      %37 = arith.subf %35, %36 : vector<32x128xf32>
      %38 = arith.mulf %37, %37 : vector<32x128xf32>
      %39 = vector.shape_cast %38 : vector<32x128xf32> to vector<4x8x128xf32>
      %cst = arith.constant dense<0.000000e+00> : vector<8x128xf32>
      %40 = vector.multi_reduction <add>, %39, %cst [0] : vector<4x8x128xf32> to vector<8x128xf32>
      %c0_17 = arith.constant 0 : index
      %c0_18 = arith.constant 0 : index
      %c0_19 = arith.constant 0 : index
      %c0_20 = arith.constant 0 : index
      %41 = vector.load %arg14[%c0_17, %c0_18, %c0_19, %c0_20] : memref<1x6x8x128xf32, #tpu.memory_space<vmem>>, vector<1x1x8x128xf32>
      %42 = vector.shape_cast %41 : vector<1x1x8x128xf32> to vector<8x128xf32>
      %43 = arith.addf %42, %40 : vector<8x128xf32>
      %c0_21 = arith.constant 0 : index
      %c0_22 = arith.constant 0 : index
      %c0_23 = arith.constant 0 : index
      %c0_24 = arith.constant 0 : index
      %44 = vector.load %arg14[%c0_21, %c0_22, %c0_23, %c0_24] : memref<1x6x8x128xf32, #tpu.memory_space<vmem>>, vector<1x1x8x128xf32>
      %45 = vector.shape_cast %44 : vector<1x1x8x128xf32> to vector<8x128xf32>
      %46 = vector.shape_cast %43 : vector<8x128xf32> to vector<1x1x8x128xf32>
      tpu.vector_store %arg14[%c0_21, %c0_22, %c0_23, %c0_24], %46 {strides = array<i32>} : memref<1x6x8x128xf32, #tpu.memory_space<vmem>>, vector<1x1x8x128xf32>,
    } else {
    }
    %c1_i32_3 = arith.constant 1 : i32
    %10 = arith.cmpi sge, %1, %c1_i32_3 : i32
    %c2_i32 = arith.constant 2 : i32
    %11 = arith.cmpi slt, %1, %c2_i32 : i32
    %12 = arith.andi %10, %11 : i1
    %13 = arith.extui %12 : i1 to i32
    %c0_i32_4 = arith.constant 0 : i32
    %14 = arith.cmpi ne, %13, %c0_i32_4 : i32
    scf.if %14 {
      %c0 = arith.constant 0 : index
      %c0_14 = arith.constant 0 : index
      %35 = vector.load %arg4[%c0, %c0_14] : memref<16x128xf32, #tpu.memory_space<vmem>>, vector<16x128xf32>
      %c0_15 = arith.constant 0 : index
      %c0_16 = arith.constant 0 : index
      %36 = vector.load %arg5[%c0_15, %c0_16] : memref<16x128xf32, #tpu.memory_space<vmem>>, vector<16x128xf32>
      %37 = arith.subf %35, %36 : vector<16x128xf32>
      %38 = arith.mulf %37, %37 : vector<16x128xf32>
      %39 = vector.shape_cast %38 : vector<16x128xf32> to vector<2x8x128xf32>
      %cst = arith.constant dense<0.000000e+00> : vector<8x128xf32>
      %40 = vector.multi_reduction <add>, %39, %cst [0] : vector<2x8x128xf32> to vector<8x128xf32>
      %c0_17 = arith.constant 0 : index
      %c1 = arith.constant 1 : index
      %c0_18 = arith.constant 0 : index
      %c0_19 = arith.constant 0 : index
      %41 = vector.load %arg14[%c0_17, %c1, %c0_18, %c0_19] : memref<1x6x8x128xf32, #tpu.memory_space<vmem>>, vector<1x1x8x128xf32>
      %42 = vector.shape_cast %41 : vector<1x1x8x128xf32> to vector<8x128xf32>
      %43 = arith.addf %42, %40 : vector<8x128xf32>
      %c0_20 = arith.constant 0 : index
      %c1_21 = arith.constant 1 : index
      %c0_22 = arith.constant 0 : index
      %c0_23 = arith.constant 0 : index
      %44 = vector.load %arg14[%c0_20, %c1_21, %c0_22, %c0_23] : memref<1x6x8x128xf32, #tpu.memory_space<vmem>>, vector<1x1x8x128xf32>
      %45 = vector.shape_cast %44 : vector<1x1x8x128xf32> to vector<8x128xf32>
      %46 = vector.shape_cast %43 : vector<8x128xf32> to vector<1x1x8x128xf32>
      tpu.vector_store %arg14[%c0_20, %c1_21, %c0_22, %c0_23], %46 {strides = array<i32>} : memref<1x6x8x128xf32, #tpu.memory_space<vmem>>, vector<1x1x8x128xf32>,
    } else {
    }
    %c2_i32_5 = arith.constant 2 : i32
    %15 = arith.cmpi sge, %1, %c2_i32_5 : i32
    %c3_i32 = arith.constant 3 : i32
    %16 = arith.cmpi slt, %1, %c3_i32 : i32
    %17 = arith.andi %15, %16 : i1
    %18 = arith.extui %17 : i1 to i32
    %c0_i32_6 = arith.constant 0 : i32
    %19 = arith.cmpi ne, %18, %c0_i32_6 : i32
    scf.if %19 {
      %c0 = arith.constant 0 : index
      %c0_14 = arith.constant 0 : index
      %35 = vector.load %arg6[%c0, %c0_14] : memref<8x128xf32, #tpu.memory_space<vmem>>, vector<8x128xf32>
      %c0_15 = arith.constant 0 : index
      %c0_16 = arith.constant 0 : index
      %36 = vector.load %arg7[%c0_15, %c0_16] : memref<8x128xf32, #tpu.memory_space<vmem>>, vector<8x128xf32>
      %37 = arith.subf %35, %36 : vector<8x128xf32>
      %38 = arith.mulf %37, %37 : vector<8x128xf32>
      %39 = vector.shape_cast %38 : vector<8x128xf32> to vector<1x8x128xf32>
      %cst = arith.constant dense<0.000000e+00> : vector<8x128xf32>
      %40 = vector.multi_reduction <add>, %39, %cst [0] : vector<1x8x128xf32> to vector<8x128xf32>
      %c0_17 = arith.constant 0 : index
      %c2 = arith.constant 2 : index
      %c0_18 = arith.constant 0 : index
      %c0_19 = arith.constant 0 : index
      %41 = vector.load %arg14[%c0_17, %c2, %c0_18, %c0_19] : memref<1x6x8x128xf32, #tpu.memory_space<vmem>>, vector<1x1x8x128xf32>
      %42 = vector.shape_cast %41 : vector<1x1x8x128xf32> to vector<8x128xf32>
      %43 = arith.addf %42, %40 : vector<8x128xf32>
      %c0_20 = arith.constant 0 : index
      %c2_21 = arith.constant 2 : index
      %c0_22 = arith.constant 0 : index
      %c0_23 = arith.constant 0 : index
      %44 = vector.load %arg14[%c0_20, %c2_21, %c0_22, %c0_23] : memref<1x6x8x128xf32, #tpu.memory_space<vmem>>, vector<1x1x8x128xf32>
      %45 = vector.shape_cast %44 : vector<1x1x8x128xf32> to vector<8x128xf32>
      %46 = vector.shape_cast %43 : vector<8x128xf32> to vector<1x1x8x128xf32>
      tpu.vector_store %arg14[%c0_20, %c2_21, %c0_22, %c0_23], %46 {strides = array<i32>} : memref<1x6x8x128xf32, #tpu.memory_space<vmem>>, vector<1x1x8x128xf32>,
    } else {
    }
    %c3_i32_7 = arith.constant 3 : i32
    %20 = arith.cmpi sge, %1, %c3_i32_7 : i32
    %c4_i32 = arith.constant 4 : i32
    %21 = arith.cmpi slt, %1, %c4_i32 : i32
    %22 = arith.andi %20, %21 : i1
    %23 = arith.extui %22 : i1 to i32
    %c0_i32_8 = arith.constant 0 : i32
    %24 = arith.cmpi ne, %23, %c0_i32_8 : i32
    scf.if %24 {
      %c0 = arith.constant 0 : index
      %c0_14 = arith.constant 0 : index
      %35 = vector.load %arg8[%c0, %c0_14] : memref<32x128xf32, #tpu.memory_space<vmem>>, vector<32x128xf32>
      %c0_15 = arith.constant 0 : index
      %c0_16 = arith.constant 0 : index
      %36 = vector.load %arg9[%c0_15, %c0_16] : memref<32x128xf32, #tpu.memory_space<vmem>>, vector<32x128xf32>
      %37 = arith.subf %35, %36 : vector<32x128xf32>
      %38 = arith.mulf %37, %37 : vector<32x128xf32>
      %39 = vector.shape_cast %38 : vector<32x128xf32> to vector<4x8x128xf32>
      %cst = arith.constant dense<0.000000e+00> : vector<8x128xf32>
      %40 = vector.multi_reduction <add>, %39, %cst [0] : vector<4x8x128xf32> to vector<8x128xf32>
      %c0_17 = arith.constant 0 : index
      %c3 = arith.constant 3 : index
      %c0_18 = arith.constant 0 : index
      %c0_19 = arith.constant 0 : index
      %41 = vector.load %arg14[%c0_17, %c3, %c0_18, %c0_19] : memref<1x6x8x128xf32, #tpu.memory_space<vmem>>, vector<1x1x8x128xf32>
      %42 = vector.shape_cast %41 : vector<1x1x8x128xf32> to vector<8x128xf32>
      %43 = arith.addf %42, %40 : vector<8x128xf32>
      %c0_20 = arith.constant 0 : index
      %c3_21 = arith.constant 3 : index
      %c0_22 = arith.constant 0 : index
      %c0_23 = arith.constant 0 : index
      %44 = vector.load %arg14[%c0_20, %c3_21, %c0_22, %c0_23] : memref<1x6x8x128xf32, #tpu.memory_space<vmem>>, vector<1x1x8x128xf32>
      %45 = vector.shape_cast %44 : vector<1x1x8x128xf32> to vector<8x128xf32>
      %46 = vector.shape_cast %43 : vector<8x128xf32> to vector<1x1x8x128xf32>
      tpu.vector_store %arg14[%c0_20, %c3_21, %c0_22, %c0_23], %46 {strides = array<i32>} : memref<1x6x8x128xf32, #tpu.memory_space<vmem>>, vector<1x1x8x128xf32>,
    } else {
    }
    %c4_i32_9 = arith.constant 4 : i32
    %25 = arith.cmpi sge, %1, %c4_i32_9 : i32
    %c5_i32 = arith.constant 5 : i32
    %26 = arith.cmpi slt, %1, %c5_i32 : i32
    %27 = arith.andi %25, %26 : i1
    %28 = arith.extui %27 : i1 to i32
    %c0_i32_10 = arith.constant 0 : i32
    %29 = arith.cmpi ne, %28, %c0_i32_10 : i32
    scf.if %29 {
      %c0 = arith.constant 0 : index
      %c0_14 = arith.constant 0 : index
      %35 = vector.load %arg10[%c0, %c0_14] : memref<16x128xf32, #tpu.memory_space<vmem>>, vector<16x128xf32>
      %c0_15 = arith.constant 0 : index
      %c0_16 = arith.constant 0 : index
      %36 = vector.load %arg11[%c0_15, %c0_16] : memref<16x128xf32, #tpu.memory_space<vmem>>, vector<16x128xf32>
      %37 = arith.subf %35, %36 : vector<16x128xf32>
      %38 = arith.mulf %37, %37 : vector<16x128xf32>
      %39 = vector.shape_cast %38 : vector<16x128xf32> to vector<2x8x128xf32>
      %cst = arith.constant dense<0.000000e+00> : vector<8x128xf32>
      %40 = vector.multi_reduction <add>, %39, %cst [0] : vector<2x8x128xf32> to vector<8x128xf32>
      %c0_17 = arith.constant 0 : index
      %c4 = arith.constant 4 : index
      %c0_18 = arith.constant 0 : index
      %c0_19 = arith.constant 0 : index
      %41 = vector.load %arg14[%c0_17, %c4, %c0_18, %c0_19] : memref<1x6x8x128xf32, #tpu.memory_space<vmem>>, vector<1x1x8x128xf32>
      %42 = vector.shape_cast %41 : vector<1x1x8x128xf32> to vector<8x128xf32>
      %43 = arith.addf %42, %40 : vector<8x128xf32>
      %c0_20 = arith.constant 0 : index
      %c4_21 = arith.constant 4 : index
      %c0_22 = arith.constant 0 : index
      %c0_23 = arith.constant 0 : index
      %44 = vector.load %arg14[%c0_20, %c4_21, %c0_22, %c0_23] : memref<1x6x8x128xf32, #tpu.memory_space<vmem>>, vector<1x1x8x128xf32>
      %45 = vector.shape_cast %44 : vector<1x1x8x128xf32> to vector<8x128xf32>
      %46 = vector.shape_cast %43 : vector<8x128xf32> to vector<1x1x8x128xf32>
      tpu.vector_store %arg14[%c0_20, %c4_21, %c0_22, %c0_23], %46 {strides = array<i32>} : memref<1x6x8x128xf32, #tpu.memory_space<vmem>>, vector<1x1x8x128xf32>,
    } else {
    }
    %c5_i32_11 = arith.constant 5 : i32
    %30 = arith.cmpi sge, %1, %c5_i32_11 : i32
    %c6_i32_12 = arith.constant 6 : i32
    %31 = arith.cmpi slt, %1, %c6_i32_12 : i32
    %32 = arith.andi %30, %31 : i1
    %33 = arith.extui %32 : i1 to i32
    %c0_i32_13 = arith.constant 0 : i32
    %34 = arith.cmpi ne, %33, %c0_i32_13 : i32
    scf.if %34 {
      %c0 = arith.constant 0 : index
      %c0_14 = arith.constant 0 : index
      %35 = vector.load %arg12[%c0, %c0_14] : memref<8x128xf32, #tpu.memory_space<vmem>>, vector<8x128xf32>
      %c0_15 = arith.constant 0 : index
      %c0_16 = arith.constant 0 : index
      %36 = vector.load %arg13[%c0_15, %c0_16] : memref<8x128xf32, #tpu.memory_space<vmem>>, vector<8x128xf32>
      %37 = arith.subf %35, %36 : vector<8x128xf32>
      %38 = arith.mulf %37, %37 : vector<8x128xf32>
      %39 = vector.shape_cast %38 : vector<8x128xf32> to vector<1x8x128xf32>
      %cst = arith.constant dense<0.000000e+00> : vector<8x128xf32>
      %40 = vector.multi_reduction <add>, %39, %cst [0] : vector<1x8x128xf32> to vector<8x128xf32>
      %c0_17 = arith.constant 0 : index
      %c5 = arith.constant 5 : index
      %c0_18 = arith.constant 0 : index
      %c0_19 = arith.constant 0 : index
      %41 = vector.load %arg14[%c0_17, %c5, %c0_18, %c0_19] : memref<1x6x8x128xf32, #tpu.memory_space<vmem>>, vector<1x1x8x128xf32>
      %42 = vector.shape_cast %41 : vector<1x1x8x128xf32> to vector<8x128xf32>
      %43 = arith.addf %42, %40 : vector<8x128xf32>
      %c0_20 = arith.constant 0 : index
      %c5_21 = arith.constant 5 : index
      %c0_22 = arith.constant 0 : index
      %c0_23 = arith.constant 0 : index
      %44 = vector.load %arg14[%c0_20, %c5_21, %c0_22, %c0_23] : memref<1x6x8x128xf32, #tpu.memory_space<vmem>>, vector<1x1x8x128xf32>
      %45 = vector.shape_cast %44 : vector<1x1x8x128xf32> to vector<8x128xf32>
      %46 = vector.shape_cast %43 : vector<8x128xf32> to vector<1x1x8x128xf32>
      tpu.vector_store %arg14[%c0_20, %c5_21, %c0_22, %c0_23], %46 {strides = array<i32>} : memref<1x6x8x128xf32, #tpu.memory_space<vmem>>, vector<1x1x8x128xf32>,
    } else {
    }
    return
  }
  func.func @transform_0(%arg0: i32, %arg1: i32) -> (i32, i32) {
    %c6_i32 = arith.constant 6 : i32
    %0 = arith.muli %arg0, %c6_i32 : i32
    %1 = arith.addi %0, %arg1 : i32
    %c0_i32 = arith.constant 0 : i32
    %2 = arith.subi %1, %c0_i32 : i32
    %c0_i32_0 = arith.constant 0 : i32
    %c0_i32_1 = arith.constant 0 : i32
    %3 = arith.maxsi %c0_i32_0, %2 : i32
    %4 = arith.minsi %c0_i32_1, %3 : i32
    %c0_i32_2 = arith.constant 0 : i32
    %c0_i32_3 = arith.constant 0 : i32
    return %4, %c0_i32_2 : i32, i32
  }
  func.func @transform_1(%arg0: i32, %arg1: i32) -> (i32, i32) {
    %c6_i32 = arith.constant 6 : i32
    %0 = arith.muli %arg0, %c6_i32 : i32
    %1 = arith.addi %0, %arg1 : i32
    %c0_i32 = arith.constant 0 : i32
    %2 = arith.subi %1, %c0_i32 : i32
    %c0_i32_0 = arith.constant 0 : i32
    %c0_i32_1 = arith.constant 0 : i32
    %3 = arith.maxsi %c0_i32_0, %2 : i32
    %4 = arith.minsi %c0_i32_1, %3 : i32
    %c0_i32_2 = arith.constant 0 : i32
    %c0_i32_3 = arith.constant 0 : i32
    return %4, %c0_i32_2 : i32, i32
  }
  func.func @transform_2(%arg0: i32, %arg1: i32) -> (i32, i32) {
    %c6_i32 = arith.constant 6 : i32
    %0 = arith.muli %arg0, %c6_i32 : i32
    %1 = arith.addi %0, %arg1 : i32
    %c1_i32 = arith.constant 1 : i32
    %2 = arith.subi %1, %c1_i32 : i32
    %c0_i32 = arith.constant 0 : i32
    %c0_i32_0 = arith.constant 0 : i32
    %3 = arith.maxsi %c0_i32, %2 : i32
    %4 = arith.minsi %c0_i32_0, %3 : i32
    %c0_i32_1 = arith.constant 0 : i32
    %c0_i32_2 = arith.constant 0 : i32
    return %4, %c0_i32_1 : i32, i32
  }
  func.func @transform_3(%arg0: i32, %arg1: i32) -> (i32, i32) {
    %c6_i32 = arith.constant 6 : i32
    %0 = arith.muli %arg0, %c6_i32 : i32
    %1 = arith.addi %0, %arg1 : i32
    %c1_i32 = arith.constant 1 : i32
    %2 = arith.subi %1, %c1_i32 : i32
    %c0_i32 = arith.constant 0 : i32
    %c0_i32_0 = arith.constant 0 : i32
    %3 = arith.maxsi %c0_i32, %2 : i32
    %4 = arith.minsi %c0_i32_0, %3 : i32
    %c0_i32_1 = arith.constant 0 : i32
    %c0_i32_2 = arith.constant 0 : i32
    return %4, %c0_i32_1 : i32, i32
  }
  func.func @transform_4(%arg0: i32, %arg1: i32) -> (i32, i32) {
    %c6_i32 = arith.constant 6 : i32
    %0 = arith.muli %arg0, %c6_i32 : i32
    %1 = arith.addi %0, %arg1 : i32
    %c2_i32 = arith.constant 2 : i32
    %2 = arith.subi %1, %c2_i32 : i32
    %c0_i32 = arith.constant 0 : i32
    %c0_i32_0 = arith.constant 0 : i32
    %3 = arith.maxsi %c0_i32, %2 : i32
    %4 = arith.minsi %c0_i32_0, %3 : i32
    %c0_i32_1 = arith.constant 0 : i32
    %c0_i32_2 = arith.constant 0 : i32
    return %4, %c0_i32_1 : i32, i32
  }
  func.func @transform_5(%arg0: i32, %arg1: i32) -> (i32, i32) {
    %c6_i32 = arith.constant 6 : i32
    %0 = arith.muli %arg0, %c6_i32 : i32
    %1 = arith.addi %0, %arg1 : i32
    %c2_i32 = arith.constant 2 : i32
    %2 = arith.subi %1, %c2_i32 : i32
    %c0_i32 = arith.constant 0 : i32
    %c0_i32_0 = arith.constant 0 : i32
    %3 = arith.maxsi %c0_i32, %2 : i32
    %4 = arith.minsi %c0_i32_0, %3 : i32
    %c0_i32_1 = arith.constant 0 : i32
    %c0_i32_2 = arith.constant 0 : i32
    return %4, %c0_i32_1 : i32, i32
  }
  func.func @transform_6(%arg0: i32, %arg1: i32) -> (i32, i32) {
    %c6_i32 = arith.constant 6 : i32
    %0 = arith.muli %arg0, %c6_i32 : i32
    %1 = arith.addi %0, %arg1 : i32
    %c3_i32 = arith.constant 3 : i32
    %2 = arith.subi %1, %c3_i32 : i32
    %c0_i32 = arith.constant 0 : i32
    %c0_i32_0 = arith.constant 0 : i32
    %3 = arith.maxsi %c0_i32, %2 : i32
    %4 = arith.minsi %c0_i32_0, %3 : i32
    %c0_i32_1 = arith.constant 0 : i32
    %c0_i32_2 = arith.constant 0 : i32
    return %4, %c0_i32_1 : i32, i32
  }
  func.func @transform_7(%arg0: i32, %arg1: i32) -> (i32, i32) {
    %c6_i32 = arith.constant 6 : i32
    %0 = arith.muli %arg0, %c6_i32 : i32
    %1 = arith.addi %0, %arg1 : i32
    %c3_i32 = arith.constant 3 : i32
    %2 = arith.subi %1, %c3_i32 : i32
    %c0_i32 = arith.constant 0 : i32
    %c0_i32_0 = arith.constant 0 : i32
    %3 = arith.maxsi %c0_i32, %2 : i32
    %4 = arith.minsi %c0_i32_0, %3 : i32
    %c0_i32_1 = arith.constant 0 : i32
    %c0_i32_2 = arith.constant 0 : i32
    return %4, %c0_i32_1 : i32, i32
  }
  func.func @transform_8(%arg0: i32, %arg1: i32) -> (i32, i32) {
    %c6_i32 = arith.constant 6 : i32
    %0 = arith.muli %arg0, %c6_i32 : i32
    %1 = arith.addi %0, %arg1 : i32
    %c4_i32 = arith.constant 4 : i32
    %2 = arith.subi %1, %c4_i32 : i32
    %c0_i32 = arith.constant 0 : i32
    %c0_i32_0 = arith.constant 0 : i32
    %3 = arith.maxsi %c0_i32, %2 : i32
    %4 = arith.minsi %c0_i32_0, %3 : i32
    %c0_i32_1 = arith.constant 0 : i32
    %c0_i32_2 = arith.constant 0 : i32
    return %4, %c0_i32_1 : i32, i32
  }
  func.func @transform_9(%arg0: i32, %arg1: i32) -> (i32, i32) {
    %c6_i32 = arith.constant 6 : i32
    %0 = arith.muli %arg0, %c6_i32 : i32
    %1 = arith.addi %0, %arg1 : i32
    %c4_i32 = arith.constant 4 : i32
    %2 = arith.subi %1, %c4_i32 : i32
    %c0_i32 = arith.constant 0 : i32
    %c0_i32_0 = arith.constant 0 : i32
    %3 = arith.maxsi %c0_i32, %2 : i32
    %4 = arith.minsi %c0_i32_0, %3 : i32
    %c0_i32_1 = arith.constant 0 : i32
    %c0_i32_2 = arith.constant 0 : i32
    return %4, %c0_i32_1 : i32, i32
  }
  func.func @transform_10(%arg0: i32, %arg1: i32) -> (i32, i32) {
    %c6_i32 = arith.constant 6 : i32
    %0 = arith.muli %arg0, %c6_i32 : i32
    %1 = arith.addi %0, %arg1 : i32
    %c5_i32 = arith.constant 5 : i32
    %2 = arith.subi %1, %c5_i32 : i32
    %c0_i32 = arith.constant 0 : i32
    %c0_i32_0 = arith.constant 0 : i32
    %3 = arith.maxsi %c0_i32, %2 : i32
    %4 = arith.minsi %c0_i32_0, %3 : i32
    %c0_i32_1 = arith.constant 0 : i32
    %c0_i32_2 = arith.constant 0 : i32
    return %4, %c0_i32_1 : i32, i32
  }
  func.func @transform_11(%arg0: i32, %arg1: i32) -> (i32, i32) {
    %c6_i32 = arith.constant 6 : i32
    %0 = arith.muli %arg0, %c6_i32 : i32
    %1 = arith.addi %0, %arg1 : i32
    %c5_i32 = arith.constant 5 : i32
    %2 = arith.subi %1, %c5_i32 : i32
    %c0_i32 = arith.constant 0 : i32
    %c0_i32_0 = arith.constant 0 : i32
    %3 = arith.maxsi %c0_i32, %2 : i32
    %4 = arith.minsi %c0_i32_0, %3 : i32
    %c0_i32_1 = arith.constant 0 : i32
    %c0_i32_2 = arith.constant 0 : i32
    return %4, %c0_i32_1 : i32, i32
  }
  func.func @transform_12(%arg0: i32, %arg1: i32) -> (i32, i32, i32, i32) {
    %c0_i32 = arith.constant 0 : i32
    %c0_i32_0 = arith.constant 0 : i32
    %c0_i32_1 = arith.constant 0 : i32
    %c0_i32_2 = arith.constant 0 : i32
    return %arg0, %c0_i32, %c0_i32_0, %c0_i32_1 : i32, i32, i32, i32
  }
}

</mosaic_0001>

<bundles_post_ra>
// kernel: _loss_compute.1
= control target key start
LH: loop header
LB: loop body
LE: loop exit
PB: predicated region body
PF: predicated region fallthrough
CT: control target
= control target key end

     0   :  { %s1917_s21 = smov 0   ;;  %s1919_s22 = smov 0   ;;  %s2097_s0 = inlined_call_operand.vmem [shape: f32[32,128], index: 0, kind: input, shape index: {}]   ;;  %s2098_s1 = inlined_call_operand.vmem [shape: f32[32,128], index: 1, kind: input, shape index: {}]   ;;  %s2099_s2 = inlined_call_operand.vmem [shape: f32[16,128], index: 2, kind: input, shape index: {}]   ;;  %s2100_s3 = inlined_call_operand.vmem [shape: f32[16,128], index: 3, kind: input, shape index: {}]   ;;  %s2101_s4 = inlined_call_operand.vmem [shape: f32[8,128], index: 4, kind: input, shape index: {}]   ;;  %s2102_s5 = inlined_call_operand.vmem [shape: f32[8,128], index: 5, kind: input, shape index: {}]   ;;  %s2103_s6 = inlined_call_operand.vmem [shape: f32[32,128], index: 6, kind: input, shape index: {}]   ;;  %s2104_s7 = inlined_call_operand.vmem [shape: f32[32,128], index: 7, kind: input, shape index: {}]   ;;  %s2105_s8 = inlined_call_operand.vmem [shape: f32[16,128], index: 8, kind: input, shape index: {}]   ;;  %s2106_s9 = inlined_call_operand.vmem [shape: f32[16,128], index: 9, kind: input, shape index: {}]   ;;  %s2107_s10 = inlined_call_operand.vmem [shape: f32[8,128], index: 10, kind: input, shape index: {}]   ;;  %s2108_s11 = inlined_call_operand.vmem [shape: f32[8,128], index: 11, kind: input, shape index: {}]   ;;  %s2109_s12 = inlined_call_operand.vmem [shape: f32[1,6,8,128], index: 12, kind: output, shape index: {}]  }
   0x1   :  { %s1921_s23 = smov 0  }
   0x2 LB: > { %s31_s24 = sadd.s32 1, %s1845_s22  ;;  %p1697_p0 = scmp.ge.s32.totalorder %s1849_s23, 1  ;;  %s1849_s23 = sphi %s1921_s23, %s22_s23   ;;  %s1845_s22 = sphi %s1919_s22, %s2111_s22   ;;  %s1841_s21 = sphi %s1917_s21, %s2110_s21  }
   0x3   : > { %p32_p1 = scmp.ge.s32.totalorder %s31_s24, 6  ;;  %p816_p2 = scmp.lt.s32.totalorder %s1849_s23, 7 }
   0x5   : > { %s2113_s24 = smov (%p32_p1, %s31_s24), 0  ;;  %p817_p3 = pnand %p1697_p0, %p816_p2 }
   0x6   : > { %p1788_p4 = scmp.ne.s32.totalorder (!%p817_p3), %s1841_s21, 0 }
   0x7   : > { %820 = sbr.rel (%p817_p3) target bundleno = 148 (0x94), region = 68 }
   0xc   : > { %1229 = sbr.rel (%p1788_p4) target bundleno = 24 (0x18), region = 72 }
  0x11   : > { %v1851_v0 = vmov 0.0  }
  0x12   : > { %1230 = vst [vmem:[%s2109_s12] sm:$0xff] %v1851_v0 }
  0x13   : > { %1231 = vst [vmem:[%s2109_s12 + $0x8] sm:$0xff] %v1851_v0 }
  0x14   : > { %1232 = vst [vmem:[%s2109_s12 + $0x10] sm:$0xff] %v1851_v0 }
  0x15   : > { %1233 = vst [vmem:[%s2109_s12 + $0x18] sm:$0xff] %v1851_v0 }
  0x16   : > { %1234 = vst [vmem:[%s2109_s12 + $0x20] sm:$0xff] %v1851_v0 }
  0x17   : > { %1235 = vst [vmem:[%s2109_s12 + $0x28] sm:$0xff] %v1851_v0 }
  0x18 PF: > { %p1236_p5 = scmp.ge.s32.totalorder %s1841_s21, 0  ;;  %p1237_p6 = scmp.lt.s32.totalorder %s1841_s21, 1 }
  0x1a   : > { %p1238_p7 = pnand %p1237_p6, %p1236_p5 }
  0x1c   : > { %1241 = sbr.rel (%p1238_p7) target bundleno = 48 (0x30), region = 76 }
  0x21   : > { %v1242_v1 = vld [vmem:[%s2097_s0] sm:$0xff]  ;;  %v1243_v2 = vld [vmem:[%s2097_s0 + $0x8] sm:$0xff]  ;;  %v1244_v3 = vld [vmem:[%s2097_s0 + $0x10] sm:$0xff] }
  0x22   : > { %v1245_v4 = vld [vmem:[%s2097_s0 + $0x18] sm:$0xff]  ;;  %v1246_v5 = vld [vmem:[%s2098_s1] sm:$0xff]  ;;  %v1247_v6 = vld [vmem:[%s2098_s1 + $0x8] sm:$0xff] }
  0x23   : > { %v1248_v7 = vld [vmem:[%s2098_s1 + $0x10] sm:$0xff]  ;;  %v1249_v8 = vld [vmem:[%s2098_s1 + $0x18] sm:$0xff]  ;;  %v1250_v9 = vsub.f32 %v1242_v1, %v1246_v5  ;;  %v1251_v10 = vsub.f32 %v1243_v2, %v1247_v6  ;;  %v1261_v19 = vld [vmem:[%s2109_s12] sm:$0xff] }
  0x24   : > { %v1252_v11 = vsub.f32 %v1244_v3, %v1248_v7  ;;  %v1253_v12 = vsub.f32 %v1245_v4, %v1249_v8 }
  0x25   : > { %v1254_v13 = vmul.f32 %v1250_v9, %v1250_v9  ;;  %v1255_v14 = vmul.f32 %v1251_v10, %v1251_v10 }
  0x26   : > { %v1256_v15 = vmul.f32 %v1252_v11, %v1252_v11  ;;  %v1257_v16 = vmul.f32 %v1253_v12, %v1253_v12 }
  0x27   : > { %v1258_v17 = vadd.f32 %v1255_v14, %v1254_v13 }
  0x29   : > { %v1259_v18 = vadd.f32 %v1258_v17, %v1256_v15 }
  0x2b   : > { %v1260_v20 = vadd.f32 %v1259_v18, %v1257_v16 }
  0x2d   : > { %v1262_v21 = vadd.f32 %v1261_v19, %v1260_v20 }
  0x2f   : > { %1263 = vst [vmem:[%s2109_s12] sm:$0xff] %v1262_v21 }
  0x30 PF: > { %p1264_p8 = scmp.ge.s32.totalorder %s1841_s21, 1  ;;  %p1265_p9 = scmp.lt.s32.totalorder %s1841_s21, 2 }
  0x32   : > { %p1266_p10 = pnand %p1265_p9, %p1264_p8 }
  0x34   : > { %1269 = sbr.rel (%p1266_p10) target bundleno = 68 (0x44), region = 80 }
  0x39   : > { %v1270_v22 = vld [vmem:[%s2099_s2] sm:$0xff]  ;;  %v1271_v23 = vld [vmem:[%s2099_s2 + $0x8] sm:$0xff] }
  0x3a   : > { %v1272_v24 = vld [vmem:[%s2100_s3] sm:$0xff]  ;;  %v1273_v25 = vld [vmem:[%s2100_s3 + $0x8] sm:$0xff] }
  0x3b   : > { %v1274_v26 = vsub.f32 %v1270_v22, %v1272_v24  ;;  %v1275_v27 = vsub.f32 %v1271_v23, %v1273_v25  ;;  %v1789_v30 = vld [vmem:[%s2109_s12 + $0x8] sm:$0xff] }
  0x3d   : > { %v1276_v28 = vmul.f32 %v1274_v26, %v1274_v26  ;;  %v1277_v29 = vmul.f32 %v1275_v27, %v1275_v27 }
  0x3f   : > { %v1278_v31 = vadd.f32 %v1277_v29, %v1276_v28 }
  0x41   : > { %v1281_v32 = vadd.f32 %v1789_v30, %v1278_v31 }
  0x43   : > { %1790 = vst [vmem:[%s2109_s12 + $0x8] sm:$0xff] %v1281_v32 }
  0x44 PF: > { %p1283_p11 = scmp.ge.s32.totalorder %s1841_s21, 2  ;;  %p1284_p12 = scmp.lt.s32.totalorder %s1841_s21, 3 }
  0x46   : > { %p1285_p13 = pnand %p1284_p12, %p1283_p11 }
  0x48   : > { %1288 = sbr.rel (%p1285_p13) target bundleno = 86 (0x56), region = 84 }
  0x4d   : > { %v1289_v33 = vld [vmem:[%s2101_s4] sm:$0xff]  ;;  %v1791_v36 = vld [vmem:[%s2109_s12 + $0x10] sm:$0xff] }
  0x4e   : > { %v1290_v34 = vld [vmem:[%s2102_s5] sm:$0xff] }
  0x4f   : > { %v1291_v35 = vsub.f32 %v1289_v33, %v1290_v34 }
  0x51   : > { %v1292_v37 = vmul.f32 %v1291_v35, %v1291_v35 }
  0x53   : > { %v1296_v38 = vadd.f32 %v1791_v36, %v1292_v37 }
  0x55   : > { %1792 = vst [vmem:[%s2109_s12 + $0x10] sm:$0xff] %v1296_v38 }
  0x56 PF: > { %p1298_p0 = scmp.ge.s32.totalorder %s1841_s21, 3  ;;  %p1299_p1 = scmp.lt.s32.totalorder %s1841_s21, 4 }
  0x58   : > { %p1300_p2 = pnand %p1299_p1, %p1298_p0 }
  0x5a   : > { %1303 = sbr.rel (%p1300_p2) target bundleno = 110 (0x6e), region = 88 }
  0x5f   : > { %v1304_v39 = vld [vmem:[%s2103_s6] sm:$0xff]  ;;  %v1305_v40 = vld [vmem:[%s2103_s6 + $0x8] sm:$0xff]  ;;  %v1306_v41 = vld [vmem:[%s2103_s6 + $0x10] sm:$0xff] }
  0x60   : > { %v1307_v42 = vld [vmem:[%s2103_s6 + $0x18] sm:$0xff]  ;;  %v1308_v43 = vld [vmem:[%s2104_s7] sm:$0xff]  ;;  %v1309_v44 = vld [vmem:[%s2104_s7 + $0x8] sm:$0xff] }
  0x61   : > { %v1310_v45 = vld [vmem:[%s2104_s7 + $0x10] sm:$0xff]  ;;  %v1311_v46 = vld [vmem:[%s2104_s7 + $0x18] sm:$0xff]  ;;  %v1312_v47 = vsub.f32 %v1304_v39, %v1308_v43  ;;  %v1313_v48 = vsub.f32 %v1305_v40, %v1309_v44 }
  0x62   : > { %v1314_v49 = vsub.f32 %v1306_v41, %v1310_v45  ;;  %v1315_v50 = vsub.f32 %v1307_v42, %v1311_v46  ;;  %v1793_v57 = vld [vmem:[%s2109_s12 + $0x18] sm:$0xff] }
  0x63   : > { %v1316_v51 = vmul.f32 %v1312_v47, %v1312_v47  ;;  %v1317_v52 = vmul.f32 %v1313_v48, %v1313_v48 }
  0x64   : > { %v1318_v53 = vmul.f32 %v1314_v49, %v1314_v49  ;;  %v1319_v54 = vmul.f32 %v1315_v50, %v1315_v50 }
  0x65   : > { %v1320_v55 = vadd.f32 %v1317_v52, %v1316_v51 }
  0x67   : > { %v1321_v56 = vadd.f32 %v1320_v55, %v1318_v53 }
  0x69   : > { %v1322_v58 = vadd.f32 %v1321_v56, %v1319_v54 }
  0x6b   : > { %v1325_v59 = vadd.f32 %v1793_v57, %v1322_v58 }
  0x6d   : > { %1794 = vst [vmem:[%s2109_s12 + $0x18] sm:$0xff] %v1325_v59 }
  0x6e PF: > { %p1327_p3 = scmp.ge.s32.totalorder %s1841_s21, 4  ;;  %p1328_p4 = scmp.lt.s32.totalorder %s1841_s21, 5 }
  0x70   : > { %p1329_p5 = pnand %p1328_p4, %p1327_p3 }
  0x72   : > { %1332 = sbr.rel (%p1329_p5) target bundleno = 130 (0x82), region = 92 }
  0x77   : > { %v1333_v60 = vld [vmem:[%s2105_s8] sm:$0xff]  ;;  %v1334_v61 = vld [vmem:[%s2105_s8 + $0x8] sm:$0xff] }
  0x78   : > { %v1335_v62 = vld [vmem:[%s2106_s9] sm:$0xff]  ;;  %v1336_v63 = vld [vmem:[%s2106_s9 + $0x8] sm:$0xff] }
  0x79   : > { %v1337_v0 = vsub.f32 %v1333_v60, %v1335_v62  ;;  %v1338_v1 = vsub.f32 %v1334_v61, %v1336_v63  ;;  %v1795_v4 = vld [vmem:[%s2109_s12 + $0x20] sm:$0xff] }
  0x7b   : > { %v1339_v2 = vmul.f32 %v1337_v0, %v1337_v0  ;;  %v1340_v3 = vmul.f32 %v1338_v1, %v1338_v1 }
  0x7d   : > { %v1341_v5 = vadd.f32 %v1340_v3, %v1339_v2 }
  0x7f   : > { %v1344_v6 = vadd.f32 %v1795_v4, %v1341_v5 }
  0x81   : > { %1796 = vst [vmem:[%s2109_s12 + $0x20] sm:$0xff] %v1344_v6 }
  0x82 PF: > { %p1346_p6 = scmp.ge.s32.totalorder %s1841_s21, 5  ;;  %p1347_p7 = scmp.lt.s32.totalorder %s1841_s21, 6 }
  0x84   : > { %p1348_p8 = pnand %p1347_p7, %p1346_p6 }
  0x86   : > { %1351 = sbr.rel (%p1348_p8) target bundleno = 148 (0x94), region = 96 }
  0x8b   : > { %v1352_v7 = vld [vmem:[%s2107_s10] sm:$0xff]  ;;  %v1797_v10 = vld [vmem:[%s2109_s12 + $0x28] sm:$0xff] }
  0x8c   : > { %v1353_v8 = vld [vmem:[%s2108_s11] sm:$0xff] }
  0x8d   : > { %v1354_v9 = vsub.f32 %v1352_v7, %v1353_v8 }
  0x8f   : > { %v1355_v11 = vmul.f32 %v1354_v9, %v1354_v9 }
  0x91   : > { %v1359_v12 = vadd.f32 %v1797_v10, %v1355_v11 }
  0x93   : > { %1798 = vst [vmem:[%s2109_s12 + $0x28] sm:$0xff] %v1359_v12 }
  0x94 PF: > { %s22_s23 = sadd.s32 1, %s1849_s23   ;;  %s2110_s21 = smov %s1845_s22 }
  0x95   : > { %p19_p9 = scmp.ge.s32.totalorder %s22_s23, 8   ;;  %s2111_s22 = smov %s2113_s24 }
  0x97   :  { %21 = sbr.rel (!%p19_p9) target bundleno = 2 (0x2), region = 164 }

</bundles_post_ra>
